<compile_context>
chip_gen: v6e
topology: v6e:2x2x1
jax: 0.10.0
libtpu: 0.0.40
codegen_flags: <defaults>
</compile_context>

<pallas_src>
import functools

import jax
import jax.numpy as jnp
from jax.experimental import pallas as pl
from jax.experimental.pallas import tpu as pltpu


def policy_kernel(x_ref, w1_ref, b1_ref, w2_ref, b2_ref, w3_ref, b3_ref,
                  o_ref, *, n_states, out_pad):
    cdt = w2_ref.dtype  # matmul compute dtype for layers 2-3 (f32 or bf16)

    # ---- layer 1: Linear(n_states, 128) + ReLU, on the VPU ----
    # K = n_states (4) is far too shallow for the MXU: compute it as n_states
    # broadcast multiply-adds (frees the MXU for layers 2-3).
    x = x_ref[...]                 # (tm, n_states) f32
    w1 = w1_ref[...]               # (n_states, hidden) f32
    h1 = b1_ref[...] + x[:, 0:1] * w1[0:1, :]
    for k in range(1, n_states):
        h1 = h1 + x[:, k:k + 1] * w1[k:k + 1, :]
    h1 = jnp.maximum(h1, 0.0)

    # ---- layer 2: Linear(128, 128) + ReLU (MXU, f32 accumulation) ----
    h2 = jnp.dot(h1.astype(cdt), w2_ref[...],
                 preferred_element_type=jnp.float32)
    h2 = jnp.maximum(h2 + b2_ref[...], 0.0)

    # ---- layer 3: Linear + log_softmax(dim=1) ----
    # W3 pad columns are zero and b3 pad lanes are -1e30 (baked in at init),
    # so pad logits vanish from max/exp with no in-kernel mask.
    logits = jnp.dot(h2.astype(cdt), w3_ref[...],
                     preferred_element_type=jnp.float32) + b3_ref[...]
    m = jnp.max(logits, axis=1, keepdims=True)
    lse = jnp.log(jnp.sum(jnp.exp(logits - m), axis=1, keepdims=True)) + m
    # Only the first out_pad lanes are written back (the rest never leave
    # vregs); lanes >= n_actions of the output are meaningless and sliced off.
    o_ref[...] = logits[:, :out_pad] - lse


def prepare_params(params, n_actions, *, out_pad=8, w_pad=128,
                   compute_dtype=jnp.float32, mask_value=-1e30):
    """One-time packing of params into kernel layout (call at init / after an
    optimizer step, NOT per forward call).

    Weights are stored (in, out) so the kernel computes y = x @ W + b.
    * W1/b1 stay f32 (layer 1 runs on the VPU).
    * W2/W3 are cast to `compute_dtype` (bf16 recommended on v5e/v6e/v7x).
    * W3 is lane-padded with zeros; b3 pad lanes carry `mask_value` so the
      log_softmax mask is free at run time. Biases stay f32 always.
    """
    del out_pad  # output-lane padding is a forward-time choice
    w1, b1, w2, b2, w3, b3 = params
    hidden = w2.shape[0]
    w3p = jnp.zeros((hidden, w_pad), compute_dtype).at[:, :n_actions].set(
        w3.astype(compute_dtype))
    b3p = jnp.full((1, w_pad), mask_value, jnp.float32).at[0, :n_actions].set(
        b3.astype(jnp.float32))
    return (w1.astype(jnp.float32),
            b1.reshape(1, hidden).astype(jnp.float32),
            w2.astype(compute_dtype),
            b2.reshape(1, hidden).astype(jnp.float32),
            w3p, b3p)


def _round_up(n, m):
    return ((n + m - 1) // m) * m


def policy_forward(x, packed_params, n_actions, *, block_b=1024, out_pad=8):
    """x: (B, n_states) float32. Returns (B, n_actions) log-probabilities.

    The batch is tiled over a 1-D grid of `block_b`-row blocks (padded up to a
    multiple of the tile for ragged B); the weights keep constant index_maps
    so they stay VMEM-resident across grid steps. Keep rollout batches a
    multiple of block_b for best utilization.
    """
    w1, b1, w2, b2, w3p, b3p = packed_params
    B, n_states = x.shape
    hidden = w1.shape[1]
    w_pad = w3p.shape[1]
    assert n_actions <= out_pad <= w_pad

    # Batch tile: block_b rows per grid step; pad B up to a multiple of the
    # tile (bounded VMEM + pipeline kept) instead of one huge full-batch block.
    block_b = _round_up(block_b, 8)
    tm = min(block_b, _round_up(B, 8))
    Bp = _round_up(B, tm)
    if Bp != B:
        x = jnp.pad(x, ((0, Bp - B), (0, 0)))
    grid = (Bp // tm,)

    kernel = functools.partial(policy_kernel, n_states=n_states,
                               out_pad=out_pad)
    const = lambda shape: pl.BlockSpec(shape, lambda i: (0, 0))

    out = pl.pallas_call(
        kernel,
        out_shape=jax.ShapeDtypeStruct((Bp, out_pad), jnp.float32),
        grid=grid,
        in_specs=[
            pl.BlockSpec((tm, n_states), lambda i: (i, 0)),  # x, batch-tiled
            const((n_states, hidden)),   # W1 (f32, VPU layer)
            const((1, hidden)),          # b1
            const((hidden, hidden)),     # W2 (compute dtype)
            const((1, hidden)),          # b2
            const((hidden, w_pad)),      # W3 (lane-padded zeros, compute dtype)
            const((1, w_pad)),           # b3 (pad lanes = -1e30 mask, f32)
        ],
        out_specs=pl.BlockSpec((tm, out_pad), lambda i: (i, 0)),
        compiler_params=pltpu.CompilerParams(
            dimension_semantics=("parallel",)),
    )(x, w1, b1, w2, b2, w3p, b3p)

    return out[:B, :n_actions]


def kaiming_uniform(key, fan_in, shape):
    # nn.init.kaiming_uniform_(w, nonlinearity='relu'):
    # bound = gain*sqrt(3/fan_in) with gain = sqrt(2).
    bound = jnp.sqrt(2.0) * jnp.sqrt(3.0 / fan_in)
    return jax.random.uniform(key, shape, jnp.float32, -bound, bound)


def init_params(key, n_states, n_actions, hidden=128):
    ks = jax.random.split(key, 6)
    # Weights stored as (in, out); biases use torch's default Linear init
    # bound = 1/sqrt(fan_in).
    w1 = kaiming_uniform(ks[0], n_states, (n_states, hidden))
    b1 = jax.random.uniform(ks[1], (hidden,), jnp.float32,
                            -1.0 / jnp.sqrt(n_states), 1.0 / jnp.sqrt(n_states))
    w2 = kaiming_uniform(ks[2], hidden, (hidden, hidden))
    b2 = jax.random.uniform(ks[3], (hidden,), jnp.float32,
                            -1.0 / jnp.sqrt(hidden), 1.0 / jnp.sqrt(hidden))
    w3 = kaiming_uniform(ks[4], hidden, (hidden, n_actions))
    b3 = jax.random.uniform(ks[5], (n_actions,), jnp.float32,
                            -1.0 / jnp.sqrt(hidden), 1.0 / jnp.sqrt(hidden))
    return w1, b1, w2, b2, w3, b3


def reference_forward(x, params):
    w1, b1, w2, b2, w3, b3 = params
    pr = jax.lax.Precision.HIGHEST  # true-f32 reference regardless of defaults
    h1 = jax.nn.relu(jnp.dot(x, w1, precision=pr) + b1)
    h2 = jax.nn.relu(jnp.dot(h1, w2, precision=pr) + b2)
    return jax.nn.log_softmax(jnp.dot(h2, w3, precision=pr) + b3, axis=1)


if __name__ == "__main__":
    n_states, n_actions, hidden = 4, 2, 128   # CartPole-v1
    key = jax.random.PRNGKey(0)
    k_params, k_x1, k_x2, k_x3 = jax.random.split(key, 4)

    params = init_params(k_params, n_states, n_actions, hidden)
    packed_f32 = prepare_params(params, n_actions)          # exact path
    packed_bf16 = prepare_params(params, n_actions,
                                 compute_dtype=jnp.bfloat16)  # production path

    # block_b=256 here so the rollout batch below exercises a multi-step grid;
    # production default is 1024.
    fwd = jax.jit(functools.partial(policy_forward, n_actions=n_actions,
                                    block_b=256))

    # 1) Small batch: single grid step.
    x_small = jax.random.normal(k_x1, (8, n_states), jnp.float32)
    lp_small = jax.block_until_ready(fwd(x_small, packed_f32))
    ref_small = reference_forward(x_small, params)
    assert lp_small.shape == (8, n_actions)
    assert jnp.allclose(lp_small, ref_small, atol=2e-5, rtol=2e-5), \
        "small-batch mismatch vs reference"

    # 2) Ragged batch: exercises the pad-to-tile path (37 -> 40 rows).
    x_rag = jax.random.normal(k_x2, (37, n_states), jnp.float32)
    lp_rag = jax.block_until_ready(fwd(x_rag, packed_f32))
    ref_rag = reference_forward(x_rag, params)
    assert lp_rag.shape == (37, n_actions)
    assert jnp.allclose(lp_rag, ref_rag, atol=2e-5, rtol=2e-5), \
        "ragged-batch mismatch vs reference"

    # 3) Rollout-sized batch: 2 grid steps of 256 rows, VMEM-resident weights.
    x_big = jax.random.normal(k_x3, (512, n_states), jnp.float32)
    lp_big = jax.block_until_ready(fwd(x_big, packed_f32))
    ref_big = reference_forward(x_big, params)
    assert lp_big.shape == (512, n_actions)
    assert jnp.allclose(lp_big, ref_big, atol=2e-5, rtol=2e-5), \
        "tiled-batch mismatch vs reference"

    # 4) bf16 MXU-compute production path (loose tolerance: bf16 operands,
    #    f32 accumulation / bias / softmax).
    lp_bf16 = jax.block_until_ready(fwd(x_big, packed_bf16))
    assert lp_bf16.shape == (512, n_actions)
    assert bool(jnp.all(jnp.isfinite(lp_bf16)))
    assert jnp.allclose(lp_bf16, ref_big, atol=3e-1), \
        "bf16-path mismatch vs reference (beyond loose tolerance)"

    print("KERNEL_OK")
</pallas_src>

<mosaic_0001>
module attributes {stable_mosaic.version = 11 : i64} {
  func.func @policy_kernel(%arg0: i32, %arg1: memref<8x4xf32, #tpu.memory_space<vmem>>, %arg2: memref<4x128xf32, #tpu.memory_space<vmem>>, %arg3: memref<1x128xf32, #tpu.memory_space<vmem>>, %arg4: memref<128x128xf32, #tpu.memory_space<vmem>>, %arg5: memref<1x128xf32, #tpu.memory_space<vmem>>, %arg6: memref<128x128xf32, #tpu.memory_space<vmem>>, %arg7: memref<1x128xf32, #tpu.memory_space<vmem>>, %arg8: memref<8x8xf32, #tpu.memory_space<vmem>>) attributes {dimension_semantics = [#tpu.dimension_semantics<parallel>], iteration_bounds = array<i64: 1>, scalar_prefetch = 0 : i64, scratch_operands = 0 : i64, tpu.core_type = #tpu.core_type<tc>, window_params = [{transform_indices = @transform_0, window_bounds = array<i64: 8, 4>}, {pipeline_mode = #tpu.pipeline_mode<synchronous>, transform_indices = @transform_1, window_bounds = array<i64: 4, 128>}, {pipeline_mode = #tpu.pipeline_mode<synchronous>, transform_indices = @transform_2, window_bounds = array<i64: 1, 128>}, {pipeline_mode = #tpu.pipeline_mode<synchronous>, transform_indices = @transform_3, window_bounds = array<i64: 128, 128>}, {pipeline_mode = #tpu.pipeline_mode<synchronous>, transform_indices = @transform_4, window_bounds = array<i64: 1, 128>}, {pipeline_mode = #tpu.pipeline_mode<synchronous>, transform_indices = @transform_5, window_bounds = array<i64: 128, 128>}, {pipeline_mode = #tpu.pipeline_mode<synchronous>, transform_indices = @transform_6, window_bounds = array<i64: 1, 128>}, {transform_indices = @transform_7, window_bounds = array<i64: 8, 8>}]} {
    %c0 = arith.constant 0 : index
    %c0_0 = arith.constant 0 : index
    %0 = vector.load %arg1[%c0, %c0_0] : memref<8x4xf32, #tpu.memory_space<vmem>>, vector<8x4xf32>
    %c0_1 = arith.constant 0 : index
    %c0_2 = arith.constant 0 : index
    %1 = vector.load %arg2[%c0_1, %c0_2] : memref<4x128xf32, #tpu.memory_space<vmem>>, vector<4x128xf32>
    %c0_3 = arith.constant 0 : index
    %c0_4 = arith.constant 0 : index
    %2 = vector.load %arg3[%c0_3, %c0_4] : memref<1x128xf32, #tpu.memory_space<vmem>>, vector<1x128xf32>
    %3 = vector.extract_strided_slice %0 {offsets = [0, 0], sizes = [8, 1], strides = [1, 1]} : vector<8x4xf32> to vector<8x1xf32>
    %4 = vector.extract_strided_slice %1 {offsets = [0, 0], sizes = [1, 128], strides = [1, 1]} : vector<4x128xf32> to vector<1x128xf32>
    %5 = vector.broadcast %3 : vector<8x1xf32> to vector<8x128xf32>
    %6 = vector.broadcast %4 : vector<1x128xf32> to vector<8x128xf32>
    %7 = arith.mulf %5, %6 : vector<8x128xf32>
    %8 = vector.broadcast %2 : vector<1x128xf32> to vector<8x128xf32>
    %9 = arith.addf %8, %7 : vector<8x128xf32>
    %10 = vector.extract_strided_slice %0 {offsets = [0, 1], sizes = [8, 1], strides = [1, 1]} : vector<8x4xf32> to vector<8x1xf32>
    %11 = vector.extract_strided_slice %1 {offsets = [1, 0], sizes = [1, 128], strides = [1, 1]} : vector<4x128xf32> to vector<1x128xf32>
    %12 = vector.broadcast %10 : vector<8x1xf32> to vector<8x128xf32>
    %13 = vector.broadcast %11 : vector<1x128xf32> to vector<8x128xf32>
    %14 = arith.mulf %12, %13 : vector<8x128xf32>
    %15 = arith.addf %9, %14 : vector<8x128xf32>
    %16 = vector.extract_strided_slice %0 {offsets = [0, 2], sizes = [8, 1], strides = [1, 1]} : vector<8x4xf32> to vector<8x1xf32>
    %17 = vector.extract_strided_slice %1 {offsets = [2, 0], sizes = [1, 128], strides = [1, 1]} : vector<4x128xf32> to vector<1x128xf32>
    %18 = vector.broadcast %16 : vector<8x1xf32> to vector<8x128xf32>
    %19 = vector.broadcast %17 : vector<1x128xf32> to vector<8x128xf32>
    %20 = arith.mulf %18, %19 : vector<8x128xf32>
    %21 = arith.addf %15, %20 : vector<8x128xf32>
    %22 = vector.extract_strided_slice %0 {offsets = [0, 3], sizes = [8, 1], strides = [1, 1]} : vector<8x4xf32> to vector<8x1xf32>
    %23 = vector.extract_strided_slice %1 {offsets = [3, 0], sizes = [1, 128], strides = [1, 1]} : vector<4x128xf32> to vector<1x128xf32>
    %24 = vector.broadcast %22 : vector<8x1xf32> to vector<8x128xf32>
    %25 = vector.broadcast %23 : vector<1x128xf32> to vector<8x128xf32>
    %26 = arith.mulf %24, %25 : vector<8x128xf32>
    %27 = arith.addf %21, %26 : vector<8x128xf32>
    %cst = arith.constant 0.000000e+00 : f32
    %28 = vector.broadcast %cst : f32 to vector<8x128xf32>
    %29 = arith.maximumf %27, %28 : vector<8x128xf32>
    %c0_5 = arith.constant 0 : index
    %c0_6 = arith.constant 0 : index
    %30 = vector.load %arg4[%c0_5, %c0_6] : memref<128x128xf32, #tpu.memory_space<vmem>>, vector<128x128xf32>
    %cst_7 = arith.constant dense<0.000000e+00> : vector<8x128xf32>
    %31 = tpu.matmul %29, %30, %cst_7 {dimension_numbers = #tpu.dot_dimension_numbers<[1], [0], [0], [1], [0, 0, 1, 1], [], []>} : vector<8x128xf32>, vector<128x128xf32>, vector<8x128xf32> -> vector<8x128xf32>
    %c0_8 = arith.constant 0 : index
    %c0_9 = arith.constant 0 : index
    %32 = vector.load %arg5[%c0_8, %c0_9] : memref<1x128xf32, #tpu.memory_space<vmem>>, vector<1x128xf32>
    %33 = vector.broadcast %32 : vector<1x128xf32> to vector<8x128xf32>
    %34 = arith.addf %31, %33 : vector<8x128xf32>
    %cst_10 = arith.constant 0.000000e+00 : f32
    %35 = vector.broadcast %cst_10 : f32 to vector<8x128xf32>
    %36 = arith.maximumf %34, %35 : vector<8x128xf32>
    %c0_11 = arith.constant 0 : index
    %c0_12 = arith.constant 0 : index
    %37 = vector.load %arg6[%c0_11, %c0_12] : memref<128x128xf32, #tpu.memory_space<vmem>>, vector<128x128xf32>
    %cst_13 = arith.constant dense<0.000000e+00> : vector<8x128xf32>
    %38 = tpu.matmul %36, %37, %cst_13 {dimension_numbers = #tpu.dot_dimension_numbers<[1], [0], [0], [1], [0, 0, 1, 1], [], []>} : vector<8x128xf32>, vector<128x128xf32>, vector<8x128xf32> -> vector<8x128xf32>
    %c0_14 = arith.constant 0 : index
    %c0_15 = arith.constant 0 : index
    %39 = vector.load %arg7[%c0_14, %c0_15] : memref<1x128xf32, #tpu.memory_space<vmem>>, vector<1x128xf32>
    %40 = vector.broadcast %39 : vector<1x128xf32> to vector<8x128xf32>
    %41 = arith.addf %38, %40 : vector<8x128xf32>
    %cst_16 = arith.constant dense<0xFF800000> : vector<8xf32>
    %42 = vector.multi_reduction <maximumf>, %41, %cst_16 [1] : vector<8x128xf32> to vector<8xf32>
    %43 = vector.shape_cast %42 : vector<8xf32> to vector<8x1xf32>
    %44 = vector.broadcast %43 : vector<8x1xf32> to vector<8x128xf32>
    %45 = arith.subf %41, %44 : vector<8x128xf32>
    %46 = math.exp %45 : vector<8x128xf32>
    %cst_17 = arith.constant dense<0.000000e+00> : vector<8xf32>
    %47 = vector.multi_reduction <add>, %46, %cst_17 [1] : vector<8x128xf32> to vector<8xf32>
    %48 = vector.shape_cast %47 : vector<8xf32> to vector<8x1xf32>
    %49 = math.log %48 : vector<8x1xf32>
    %50 = arith.addf %49, %43 : vector<8x1xf32>
    %51 = vector.extract_strided_slice %41 {offsets = [0, 0], sizes = [8, 8], strides = [1, 1]} : vector<8x128xf32> to vector<8x8xf32>
    %52 = vector.broadcast %50 : vector<8x1xf32> to vector<8x8xf32>
    %53 = arith.subf %51, %52 : vector<8x8xf32>
    %c0_18 = arith.constant 0 : index
    %c0_19 = arith.constant 0 : index
    %54 = vector.load %arg8[%c0_18, %c0_19] : memref<8x8xf32, #tpu.memory_space<vmem>>, vector<8x8xf32>
    tpu.vector_store %arg8[%c0_18, %c0_19], %53 {strides = array<i32>} : memref<8x8xf32, #tpu.memory_space<vmem>>, vector<8x8xf32>,
    return
  }
  func.func @transform_0(%arg0: i32) -> (i32, i32) {
    %c0_i32 = arith.constant 0 : i32
    %c0_i32_0 = arith.constant 0 : i32
    return %arg0, %c0_i32 : i32, i32
  }
  func.func @transform_1(%arg0: i32) -> (i32, i32) {
    %c0_i32 = arith.constant 0 : i32
    %c0_i32_0 = arith.constant 0 : i32
    %c0_i32_1 = arith.constant 0 : i32
    return %c0_i32, %c0_i32_0 : i32, i32
  }
  func.func @transform_2(%arg0: i32) -> (i32, i32) {
    %c0_i32 = arith.constant 0 : i32
    %c0_i32_0 = arith.constant 0 : i32
    %c0_i32_1 = arith.constant 0 : i32
    return %c0_i32, %c0_i32_0 : i32, i32
  }
  func.func @transform_3(%arg0: i32) -> (i32, i32) {
    %c0_i32 = arith.constant 0 : i32
    %c0_i32_0 = arith.constant 0 : i32
    %c0_i32_1 = arith.constant 0 : i32
    return %c0_i32, %c0_i32_0 : i32, i32
  }
  func.func @transform_4(%arg0: i32) -> (i32, i32) {
    %c0_i32 = arith.constant 0 : i32
    %c0_i32_0 = arith.constant 0 : i32
    %c0_i32_1 = arith.constant 0 : i32
    return %c0_i32, %c0_i32_0 : i32, i32
  }
  func.func @transform_5(%arg0: i32) -> (i32, i32) {
    %c0_i32 = arith.constant 0 : i32
    %c0_i32_0 = arith.constant 0 : i32
    %c0_i32_1 = arith.constant 0 : i32
    return %c0_i32, %c0_i32_0 : i32, i32
  }
  func.func @transform_6(%arg0: i32) -> (i32, i32) {
    %c0_i32 = arith.constant 0 : i32
    %c0_i32_0 = arith.constant 0 : i32
    %c0_i32_1 = arith.constant 0 : i32
    return %c0_i32, %c0_i32_0 : i32, i32
  }
  func.func @transform_7(%arg0: i32) -> (i32, i32) {
    %c0_i32 = arith.constant 0 : i32
    %c0_i32_0 = arith.constant 0 : i32
    return %arg0, %c0_i32 : i32, i32
  }
}

</mosaic_0001>

<bundles_post_ra>
// kernel: policy_forward.1
= control target key start
LH: loop header
LB: loop body
LE: loop exit
PB: predicated region body
PF: predicated region fallthrough
CT: control target
= control target key end

     0   :  { %12 = vsyncpa [#allocation3], 0  ;;  %s589_s0 = inlined_call_operand.vmem [shape: f32[8,4], index: 0, kind: input, shape index: {}]   ;;  %s590_s1 = inlined_call_operand.vmem [shape: f32[4,128], index: 1, kind: input, shape index: {}]   ;;  %s591_s2 = inlined_call_operand.vmem [shape: f32[1,128], index: 2, kind: input, shape index: {}]   ;;  %s592_s3 = inlined_call_operand.hbm [shape: f32[128,128], index: 3, kind: input, shape index: {}]   ;;  %s593_s4 = inlined_call_operand.vmem [shape: f32[1,128], index: 4, kind: input, shape index: {}]   ;;  %s594_s5 = inlined_call_operand.hbm [shape: f32[128,128], index: 5, kind: input, shape index: {}]   ;;  %s595_s6 = inlined_call_operand.vmem [shape: f32[1,128], index: 6, kind: input, shape index: {}]   ;;  %s596_s7 = inlined_call_operand.vmem [shape: f32[8,8], index: 7, kind: output, shape index: {}]  }
   0x1   :  { %13 = vsyncpa [#allocation5], 0  ;;  %s481_s24 = smov [#allocation2]  }
   0x2   :  { %s25_s25 = sshll.u32 %s481_s24, 4  ;;  %s26_s25 = int_to_ptr.vmem [resolvable:$true] %s25_s25 }
   0x3   :  { %s445_s26 = scalar_lea.vmem %s26_s25, 2048  ;;  %p450_p1 = scmp.lt.s32.totalorder %s26_s25, %s26_s25 }
   0x4   :  { %p446_p0 = scmp.ne.s32.totalorder %s26_s25, %s445_s26  ;;  %p451_p2 = scmp.lt.s32.totalorder %s445_s26, %s445_s26 }
   0x6   :  { %p452_p3 = por %p451_p2, %p450_p1 }
   0x8   :  { %p453_p4 = pnand %p452_p3, %p446_p0 }
   0xa   :  { %456 = shalt.err (!%p453_p4)
}
   0xb   :  { %s482_s27 = smov 128   ;;  %s483_s28 = smov 8  }
   0xc   :  { %31 = dma.hbm_to_vmem [thread:$0]  %s592_s3, 2048, %s26_s25, [#allocation3], %s482_s27, %s482_s27, %s483_s28  }
   0xd   :  { %s484_s8 = smov [#allocation4]  }
   0xe   :  { %s39_s9 = sshll.u32 %s484_s8, 4  ;;  %s40_s9 = int_to_ptr.vmem [resolvable:$true] %s39_s9 }
   0xf   :  { %s465_s10 = scalar_lea.vmem %s40_s9, 2048  ;;  %p470_p6 = scmp.lt.s32.totalorder %s40_s9, %s40_s9 }
  0x10   :  { %p466_p5 = scmp.ne.s32.totalorder %s40_s9, %s465_s10  ;;  %p471_p7 = scmp.lt.s32.totalorder %s465_s10, %s465_s10 }
  0x12   :  { %p472_p8 = por %p471_p7, %p470_p6 }
  0x14   :  { %p473_p9 = pnand %p472_p8, %p466_p5 }
  0x16   :  { %476 = shalt.err (!%p473_p9)
}
  0x17   :  { %45 = dma.hbm_to_vmem [thread:$0]  %s594_s5, 2048, %s40_s9, [#allocation5], %s482_s27, %s482_s27, %s483_s28  }
  0x18   :  { %477 = dma.done.wait [#allocation3], 2048  }
  0x19   :  { %478 = vsyncadd [#allocation3], 4294965248 }
  0x1a   :  { %479 = dma.done.wait [#allocation5], 2048  }
  0x1b   :  { %480 = vsyncadd [#allocation5], 4294965248  ;;  %v485_v0 = vmov 0   ;;  %v486_v1 = vmov 2   ;;  %v487_v2 = vmov 0.0   ;;  %v54_v3 = vld [vmem:[%s589_s0] sm:$0xff]  ;;  %v62_v35 = vlaneseq }
  0x1c   :  { %428 = vset.pattern.permute.xlu0 %v485_v0  ;;  %430 = vset.pattern.permute.xlu1 %v486_v1  ;;  %v120_v4 = vld [vmem:[#allocation2 + $0x78] sm:$0xff]  ;;  %v119_v5 = vld [vmem:[#allocation2 + $0x70] sm:$0xff]  ;;  %v488_v6 = vmov 1   ;;  %v489_v7 = vmov 3   ;;  %v118_v8 = vld [vmem:[#allocation2 + $0x68] sm:$0xff]  ;;  %vm490_vm0 = vmmov 0  }
  0x1d   :  { %348 = vmatprep.subr.mxu0 %v487_v2  ;;  %383 = vmatprep.subr.mxu1 %v487_v2  ;;  %v117_v9 = vld [vmem:[#allocation2 + $0x60] sm:$0xff]  ;;  %v116_v10 = vld [vmem:[#allocation2 + $0x58] sm:$0xff]  ;;  %v115_v11 = vld [vmem:[#allocation2 + $0x50] sm:$0xff]  ;;  %v63_v36 = vshrl.u32 %v62_v35, 7  ;;  %vm303_vm1 = vcmask 64512  }
  0x1e   :  { %59 = vperm.xlu0 %428, %v54_v3   ;;  %85 = vperm.xlu1 %430, %v54_v3   ;;  %v214_v12 = vld [vmem:[#allocation4 + $0x78] sm:$0xff]  ;;  %v213_v13 = vld [vmem:[#allocation4 + $0x70] sm:$0xff]  ;;  %v114_v14 = vld [vmem:[#allocation2 + $0x48] sm:$0xff] }
  0x1f   :  { %349 = vmatpush3.msra.mxu0 %v120_v4  ;;  %380 = vmatprep.mubr.msk.f32.mxu0 %vm490_vm0, %v487_v2  ;;  %v212_v15 = vld [vmem:[#allocation4 + $0x68] sm:$0xff]  ;;  %v113_v16 = vld [vmem:[#allocation2 + $0x40] sm:$0xff]  ;;  %v112_v18 = vld [vmem:[#allocation2 + $0x38] sm:$0xff]  ;;  %v64_v37 = vsub.s32 0, %v63_v36  ;;  %v80_v40 = vsub.s32 1, %v63_v36  ;;  %v90_v42 = vsub.s32 2, %v63_v36 }
  0x20   :  { %350 = vmatprep.subr.mxu0 %v487_v2  ;;  %415 = vmatprep.mubr.msk.f32.mxu1 %vm490_vm0, %v487_v2  ;;  %v211_v17 = vld [vmem:[#allocation4 + $0x60] sm:$0xff]  ;;  %v210_v19 = vld [vmem:[#allocation4 + $0x58] sm:$0xff]  ;;  %v111_v20 = vld [vmem:[#allocation2 + $0x30] sm:$0xff]  ;;  %v100_v44 = vsub.s32 3, %v63_v36 }
  0x21   :  { %351 = vmatpush3.msra.mxu0 %v119_v5  ;;  %384 = vmatpush3.msra.mxu1 %v214_v12  ;;  %v209_v21 = vld [vmem:[#allocation4 + $0x50] sm:$0xff]  ;;  %v110_v22 = vld [vmem:[#allocation2 + $0x28] sm:$0xff]  ;;  %v109_v24 = vld [vmem:[#allocation2 + $0x20] sm:$0xff] }
  0x22   :  { %429 = vset.pattern.permute.xlu0 %v488_v6  ;;  %431 = vset.pattern.permute.xlu1 %v489_v7  ;;  %v208_v23 = vld [vmem:[#allocation4 + $0x48] sm:$0xff]  ;;  %v207_v25 = vld [vmem:[#allocation4 + $0x40] sm:$0xff]  ;;  %v108_v26 = vld [vmem:[#allocation2 + $0x18] sm:$0xff] }
  0x23   :  { %75 = vperm.xlu0 %429, %v54_v3   ;;  %95 = vperm.xlu1 %431, %v54_v3   ;;  %v206_v27 = vld [vmem:[#allocation4 + $0x38] sm:$0xff]  ;;  %v107_v28 = vld [vmem:[#allocation2 + $0x10] sm:$0xff]  ;;  %v106_v30 = vld [vmem:[#allocation2 + $0x8] sm:$0xff] }
  0x24   :  { %352 = vmatprep.subr.mxu0 %v487_v2  ;;  %385 = vmatprep.subr.mxu1 %v487_v2  ;;  %v205_v29 = vld [vmem:[#allocation4 + $0x30] sm:$0xff]  ;;  %v204_v31 = vld [vmem:[#allocation4 + $0x28] sm:$0xff]  ;;  %v105_v32 = vld [vmem:[#allocation2] sm:$0xff] }
  0x25   :  { %353 = vmatpush3.msra.mxu0 %v118_v8  ;;  %386 = vmatpush3.msra.mxu1 %v213_v13  ;;  %v203_v33 = vld [vmem:[#allocation4 + $0x20] sm:$0xff]  ;;  %v202_v34 = vld [vmem:[#allocation4 + $0x18] sm:$0xff]  ;;  %v201_v60 = vld [vmem:[#allocation4 + $0x10] sm:$0xff] }
  0x26   :  { %354 = vmatprep.subr.mxu0 %v487_v2  ;;  %387 = vmatprep.subr.mxu1 %v487_v2  ;;  %v55_v38 = vld [vmem:[%s590_s1] sm:$0xf]  ;;  %v200_v61 = vld [vmem:[#allocation4 + $0x8] sm:$0xff] }
  0x27   :  { %355 = vmatpush3.msra.mxu0 %v117_v9  ;;  %432 = vset.pattern.permute.xlu0 %v489_v7  ;;  %v65_v39 = vrot.slane %v55_v38, %v64_v37  ;;  %v81_v46 = vrot.slane %v55_v38, %v80_v40  ;;  %v311_v47 = vld [vmem:[%s591_s2] ss:$0 sm:$0xff]  ;;  %v91_v48 = vrot.slane %v55_v38, %v90_v42 }
  0x28   :  { %356 = vmatprep.subr.mxu0 %v487_v2  ;;  %388 = vmatpush3.msra.mxu1 %v212_v15  ;;  %v101_v49 = vrot.slane %v55_v38, %v100_v44  ;;  %v199_v62 = vld [vmem:[#allocation4] sm:$0xff] }
  0x29   :  { %357 = vmatpush3.msra.mxu0 %v116_v10  ;;  %389 = vmatprep.subr.mxu1 %v487_v2  ;;  %v312_v63 = vld [vmem:[%s593_s4] ss:$0 sm:$0xff] }
  0x2a   :  { %358 = vmatprep.subr.mxu0 %v487_v2  ;;  %390 = vmatpush3.msra.mxu1 %v211_v17  ;;  %v313_v5 = vld [vmem:[%s595_s6] ss:$0 sm:$0xff] }
  0x2b   :  { %359 = vmatpush3.msra.mxu0 %v115_v11  ;;  %391 = vmatprep.subr.mxu1 %v487_v2 }
  0x2c   :  { %360 = vmatprep.subr.mxu0 %v487_v2  ;;  %392 = vmatpush3.msra.mxu1 %v210_v19 }
  0x2d   :  { %361 = vmatpush3.msra.mxu0 %v114_v14  ;;  %393 = vmatprep.subr.mxu1 %v487_v2 }
  0x2e   :  { %362 = vmatprep.subr.mxu0 %v487_v2  ;;  %394 = vmatpush3.msra.mxu1 %v209_v21 }
  0x2f   :  { %363 = vmatpush3.msra.mxu0 %v113_v16  ;;  %395 = vmatprep.subr.mxu1 %v487_v2 }
  0x30   :  { %364 = vmatprep.subr.mxu0 %v487_v2  ;;  %396 = vmatpush3.msra.mxu1 %v208_v23 }
  0x31   :  { %365 = vmatpush3.msra.mxu0 %v112_v18  ;;  %397 = vmatprep.subr.mxu1 %v487_v2 }
  0x32   :  { %366 = vmatprep.subr.mxu0 %v487_v2  ;;  %398 = vmatpush3.msra.mxu1 %v207_v25 }
  0x33   :  { %367 = vmatpush3.msra.mxu0 %v111_v20  ;;  %399 = vmatprep.subr.mxu1 %v487_v2 }
  0x34   :  { %368 = vmatprep.subr.mxu0 %v487_v2  ;;  %400 = vmatpush3.msra.mxu1 %v206_v27 }
  0x35   :  { %369 = vmatpush3.msra.mxu0 %v110_v22  ;;  %401 = vmatprep.subr.mxu1 %v487_v2 }
  0x36   :  { %370 = vmatprep.subr.mxu0 %v487_v2  ;;  %402 = vmatpush3.msra.mxu1 %v205_v29 }
  0x37   :  { %371 = vmatpush3.msra.mxu0 %v109_v24  ;;  %403 = vmatprep.subr.mxu1 %v487_v2 }
  0x38   :  { %372 = vmatprep.subr.mxu0 %v487_v2  ;;  %404 = vmatpush3.msra.mxu1 %v204_v31 }
  0x39   :  { %373 = vmatpush3.msra.mxu0 %v108_v26  ;;  %405 = vmatprep.subr.mxu1 %v487_v2 }
  0x3a   :  { %374 = vmatprep.subr.mxu0 %v487_v2  ;;  %406 = vmatpush3.msra.mxu1 %v203_v33 }
  0x3b   :  { %375 = vmatpush3.msra.mxu0 %v107_v28  ;;  %407 = vmatprep.subr.mxu1 %v487_v2 }
  0x3c   :  { %376 = vmatprep.subr.mxu0 %v487_v2  ;;  %408 = vmatpush3.msra.mxu1 %v202_v34 }
  0x3d   :  { %377 = vmatpush3.msra.mxu0 %v106_v30  ;;  %409 = vmatprep.subr.mxu1 %v487_v2 }
  0x3e   :  { %378 = vmatprep.subr.mxu0 %v487_v2  ;;  %410 = vmatpush3.msra.mxu1 %v201_v60 }
  0x3f   :  { %379 = vmatpush3.msra.mxu0 %v105_v32  ;;  %411 = vmatprep.subr.mxu1 %v487_v2 }
  0x40   :  { %412 = vmatpush3.msra.mxu1 %v200_v61 }
  0x41   :  { %413 = vmatprep.subr.mxu1 %v487_v2 }
  0x42   :  { %414 = vmatpush3.msra.mxu1 %v199_v62 }
  0x99   :  { %v60_v41 = vpop.permute.xlu0 %59  ;;  %v86_v43 = vpop.permute.xlu1 %85 }
  0x9a   :  { %v66_v45 = vmul.f32 %v65_v39, %v60_v41  ;;  %v92_v54 = vmul.f32 %v91_v48, %v86_v43 }
  0x9c   :  { %v73_v52 = vadd.f32 %v311_v47, %v66_v45 }
  0x9e   :  { %v76_v50 = vpop.permute.xlu0 %75  ;;  %v96_v51 = vpop.permute.xlu1 %95 }
  0x9f   :  { %v82_v53 = vmul.f32 %v81_v46, %v76_v50  ;;  %v102_v56 = vmul.f32 %v101_v49, %v96_v51 }
  0xa1   :  { %v83_v55 = vadd.f32 %v82_v53, %v73_v52 }
  0xa3   :  { %v93_v57 = vadd.f32 %v92_v54, %v83_v55 }
  0xa5   :  { %v103_v58 = vadd.f32 %v102_v56, %v93_v57 }
  0xa7   :  { %v104_v59 = vmax.f32 %v103_v58, 0.0 }
  0xa9   :  { %381 = vmatmul.mubr.f32.vlgmr.msra.gmra.mxu0 %v104_v59 }
 0x169   :  { %v194_v0 = vpop.f32.mrf.mxu0 }
 0x16a   :  { %v195_v1 = vadd.f32 %v312_v63, %v194_v0 }
 0x16b   :  { %v382_v3 = vpop.f32.mrf.mxu0 }
 0x16c   :  { %v198_v4 = vmax.f32 %v195_v1, 0.0 }
 0x16e   :  { %416 = vmatmul.mubr.f32.vlgmr.msra.gmra.mxu1 %v198_v4 }
 0x22e   :  { %v288_v6 = vpop.f32.mrf.mxu1 }
 0x22f   :  { %v289_v7 = vadd.f32 %v313_v5, %v288_v6 }
 0x230   :  { %v417_v8 = vpop.f32.mrf.mxu1 }
 0x231   :  { %292 = vmax.xlane.f32.xlu1 %v289_v7 }
 0x2ba   :  { %v293_v2 = vpop.xlane.xlu1 %292 }
 0x2bb   :  { %v294_v9 = vsub.f32 %v289_v7, %v293_v2 }
 0x2bd   :  { %v295_v10 = vmul.f32 1.442695, %v294_v9 }
 0x2bf   :  { %433 = vpow2.f32 %v295_v10 }
 0x2cc   :  { %v434_v11 = vpop.eup %433 }
 0x2cd   :  { %297 = vadd.xlane.f32.xlu0 %v434_v11 }
 0x356   :  { %v298_v12 = vpop.xlane.xlu0 %297 }
 0x357   :  { %435 = vlog2.f32 %v298_v12 }
 0x364   :  { %v436_v13 = vpop.eup %435 }
 0x365   :  { %v300_v14 = vmul.f32 0.6931472, %v436_v13 }
 0x367   :  { %v301_v15 = vadd.f32 %v300_v14, %v293_v2 }
 0x369   :  { %v302_v16 = vsub.f32 %v289_v7, %v301_v15 }
 0x36b   :  { %304 = vst.msk [vmem:[%s596_s7] sm:$0xff] %vm303_vm1, %v302_v16 }
 0x36c   :  { %309 = vsyncpa [#allocation3], 1 }
 0x36d   :  { %310 = vsyncpa [#allocation5], 1 }

</bundles_post_ra>
